<compile_context>
chip_gen: v7x
topology: tpu7x:2x2x1
jax: 0.10.0
libtpu: 0.0.40
codegen_flags: <defaults>
</compile_context>

<pallas_src>
import math
import functools

import jax
import jax.numpy as jnp
from jax import lax
from jax.experimental import pallas as pl
from jax.experimental.pallas import tpu as pltpu


NEG_INF = -1e30


def _round_up(x, m):
    return (x + m - 1) // m * m


# ---------------------------------------------------------------------------
# Prep kernel: L2-normalize the columns of the (H2, C_pad) transposed ArcFace
# weight.  Hoisted out of the main kernel so it runs once, not per batch tile.
# ---------------------------------------------------------------------------
def normalize_cols_kernel(w_ref, o_ref):
    w = w_ref[...].astype(jnp.float32)
    ssq = jnp.sum(w * w, axis=0, keepdims=True)          # (1, TILE_C)
    inv = lax.rsqrt(jnp.maximum(ssq, 1e-24))             # ~ 1 / max(||w||, 1e-12)
    o_ref[...] = (w * inv).astype(o_ref.dtype)


def normalize_class_weights(wa_t, tile_c):
    h2, c_pad = wa_t.shape
    return pl.pallas_call(
        normalize_cols_kernel,
        out_shape=jax.ShapeDtypeStruct((h2, c_pad), wa_t.dtype),
        grid_spec=pltpu.PrefetchScalarGridSpec(
            num_scalar_prefetch=0,
            grid=(c_pad // tile_c,),
            in_specs=[pl.BlockSpec((h2, tile_c), lambda j: (0, j))],
            out_specs=pl.BlockSpec((h2, tile_c), lambda j: (0, j)),
        ),
        compiler_params=pltpu.CompilerParams(dimension_semantics=("parallel",)),
    )(wa_t)


# ---------------------------------------------------------------------------
# Main kernel: MLP + ArcFace margin + online-softmax cross entropy.
# Grid = (batch_tiles [parallel], class_tiles [arbitrary]).
# ---------------------------------------------------------------------------
def arcface_mlp_kernel(x_ref, y_ref, w1_ref, b1_ref, w2_ref, b2_ref, wn_ref,
                       nll_ref, zn_s, m_s, l_s, t_s, *,
                       cos_m, sin_m, th, mm, rescale, num_classes, tile_c):
    j = pl.program_id(1)

    @pl.when(j == 0)
    def _init():
        # MLP (small matmuls) + embedding normalization, once per batch tile.
        x = x_ref[...].astype(jnp.float32)
        h = jnp.dot(x, w1_ref[...].astype(jnp.float32),
                    preferred_element_type=jnp.float32) + b1_ref[...].astype(jnp.float32)
        h = jnp.maximum(h, 0.0)
        z = jnp.dot(h, w2_ref[...].astype(jnp.float32),
                    preferred_element_type=jnp.float32) + b2_ref[...].astype(jnp.float32)
        ssq = jnp.sum(z * z, axis=-1, keepdims=True)
        zn_s[...] = z * lax.rsqrt(jnp.maximum(ssq, 1e-24))   # EUP rsqrt, no divide
        m_s[...] = jnp.full_like(m_s, NEG_INF)
        l_s[...] = jnp.zeros_like(l_s)
        t_s[...] = jnp.zeros_like(t_s)

    # Cosine logits for this class tile: (TILE_B, H2) @ (H2, TILE_C).
    # Class weight tile is pre-normalized & pre-transposed -> no in-kernel .T.
    # Casting zn to the weight dtype lets bf16 weights run the MXU in bf16.
    wn = wn_ref[...]
    cos = jnp.dot(zn_s[...].astype(wn.dtype), wn,
                  preferred_element_type=jnp.float32)        # (TILE_B, TILE_C)

    sin = jnp.sqrt(jnp.maximum(1.0 - cos * cos, 0.0))        # clamp rounding > 1
    cwm = jnp.where(cos > th, cos * cos_m - sin * sin_m, cos - mm)

    col = jax.lax.broadcasted_iota(jnp.int32, cos.shape, 1) + j * tile_c
    y = y_ref[...]                                           # (TILE_B, 1) int32
    ohe = col == y
    logit = jnp.where(ohe, cwm, cos) * rescale
    logit = jnp.where(col < num_classes, logit, NEG_INF)     # mask padded classes

    # Online softmax accumulation over class tiles.
    tile_max = jnp.max(logit, axis=-1, keepdims=True)
    m_new = jnp.maximum(m_s[...], tile_max)
    alpha = jnp.exp(m_s[...] - m_new)
    p = jnp.exp(logit - m_new)
    l_s[...] = alpha * l_s[...] + jnp.sum(p, axis=-1, keepdims=True)
    t_s[...] = t_s[...] + jnp.sum(jnp.where(ohe, logit, 0.0), axis=-1, keepdims=True)
    m_s[...] = m_new

    @pl.when(j == pl.num_programs(1) - 1)
    def _finalize():
        # per-sample NLL = logsumexp(logit) - logit[target]
        nll_ref[...] = (m_s[...] + jnp.log(l_s[...]) - t_s[...]).astype(nll_ref.dtype)


def arcface_loss_with_mlp(x, y, params, *, m=0.5, s=64.0, tile_b=None, tile_c=None):
    B, in_features = x.shape
    H1 = params["w1"].shape[1]
    H2 = params["w2"].shape[1]
    C = params["wa"].shape[0]

    # Tile sizes: lane-dense class tiles (multiple of 128, sized for v7x's smaller
    # VMEM), sublane-aligned batch tiles.
    if tile_c is None:
        tile_c = min(_round_up(C, 128), 512)
    c_pad = _round_up(C, tile_c)
    if tile_b is None:
        tile_b = min(_round_up(B, 8), 128)
    b_pad = _round_up(B, tile_b)

    # Wrapper-side layout plumbing: pad batch, pad + transpose class weights.
    x_p = jnp.zeros((b_pad, in_features), x.dtype).at[:B].set(x)
    y_p = jnp.zeros((b_pad, 1), jnp.int32).at[:B, 0].set(y.astype(jnp.int32))
    wa_t = jnp.zeros((H2, c_pad), params["wa"].dtype).at[:, :C].set(params["wa"].T)

    # Normalize class weights once (tiny separate kernel, hoisted).
    wn_t = normalize_class_weights(wa_t, tile_c)

    cos_m, sin_m = math.cos(m), math.sin(m)
    kernel = functools.partial(
        arcface_mlp_kernel,
        cos_m=cos_m, sin_m=sin_m, th=-cos_m, mm=sin_m * m,
        rescale=s, num_classes=C, tile_c=tile_c,
    )

    grid = (b_pad // tile_b, c_pad // tile_c)
    nll = pl.pallas_call(
        kernel,
        out_shape=jax.ShapeDtypeStruct((b_pad, 1), jnp.float32),
        grid_spec=pltpu.PrefetchScalarGridSpec(
            num_scalar_prefetch=0,
            grid=grid,
            in_specs=[
                pl.BlockSpec((tile_b, in_features), lambda i, j: (i, 0)),   # x
                pl.BlockSpec((tile_b, 1), lambda i, j: (i, 0)),             # y
                pl.BlockSpec((in_features, H1), lambda i, j: (0, 0)),       # w1
                pl.BlockSpec((1, H1), lambda i, j: (0, 0)),                 # b1
                pl.BlockSpec((H1, H2), lambda i, j: (0, 0)),                # w2
                pl.BlockSpec((1, H2), lambda i, j: (0, 0)),                 # b2
                pl.BlockSpec((H2, tile_c), lambda i, j: (0, j)),            # wn (normalized, transposed)
            ],
            out_specs=pl.BlockSpec((tile_b, 1), lambda i, j: (i, 0)),
            scratch_shapes=[
                pltpu.VMEM((tile_b, H2), jnp.float32),   # normalized embedding
                pltpu.VMEM((tile_b, 1), jnp.float32),    # running max
                pltpu.VMEM((tile_b, 1), jnp.float32),    # running sum-exp
                pltpu.VMEM((tile_b, 1), jnp.float32),    # target logit
            ],
        ),
        compiler_params=pltpu.CompilerParams(
            dimension_semantics=("parallel", "arbitrary"),
            vmem_limit_bytes=32 * 1024 * 1024,
        ),
    )(x_p, y_p, params["w1"], params["b1"], params["w2"], params["b2"], wn_t)

    # Finalize the mean outside the kernel, over the TRUE batch size.
    return jnp.sum(nll[:B, 0]) / B
    # TODO(synk): _log_accuracy_on_batch is a Python-side logging side-effect; not part of the returned loss.


def reference_loss(x, y, params, *, m=0.5, s=64.0):
    # Pure-JAX reference mirroring the PyTorch forward, for verification.
    cos_m, sin_m = math.cos(m), math.sin(m)
    h = jnp.maximum(x @ params["w1"] + params["b1"], 0.0)
    z = h @ params["w2"] + params["b2"]
    zn = z / jnp.maximum(jnp.linalg.norm(z, axis=-1, keepdims=True), 1e-12)
    wn = params["wa"] / jnp.maximum(
        jnp.linalg.norm(params["wa"], axis=-1, keepdims=True), 1e-12)
    cos = zn @ wn.T
    sin = jnp.sqrt(jnp.maximum(1.0 - cos ** 2, 0.0))
    cwm = jnp.where(cos > -cos_m, cos * cos_m - sin * sin_m, cos - sin_m * m)
    ohe = jax.nn.one_hot(y, cos.shape[1], dtype=bool)
    logit = jnp.where(ohe, cwm, cos) * s
    logp = jax.nn.log_softmax(logit, axis=-1)
    return -jnp.mean(jnp.take_along_axis(logp, y[:, None], axis=1))


if __name__ == "__main__":
    B, IN_FEATURES, NUM_CLASSES = 8, 32, 10
    MLP_FEATURES = [64, 16]
    H1, H2 = MLP_FEATURES

    key = jax.random.PRNGKey(0)
    kx, ky, k1, k2, k3, k4, k5 = jax.random.split(key, 7)

    x = jax.random.normal(kx, (B, IN_FEATURES), jnp.float32)
    y = jax.random.randint(ky, (B,), 0, NUM_CLASSES, dtype=jnp.int32)

    # Deterministic parameter init (Linear weights ~ U(-1/sqrt(fan_in), ...),
    # ArcFace weight via xavier_uniform), stored pre-transposed as (in, out).
    b1_bound = 1.0 / math.sqrt(IN_FEATURES)
    b2_bound = 1.0 / math.sqrt(H1)
    xavier = math.sqrt(6.0 / (NUM_CLASSES + H2))
    params = {
        "w1": jax.random.uniform(k1, (IN_FEATURES, H1), jnp.float32, -b1_bound, b1_bound),
        "b1": jax.random.uniform(k2, (1, H1), jnp.float32, -b1_bound, b1_bound),
        "w2": jax.random.uniform(k3, (H1, H2), jnp.float32, -b2_bound, b2_bound),
        "b2": jax.random.uniform(k4, (1, H2), jnp.float32, -b2_bound, b2_bound),
        "wa": jax.random.uniform(k5, (NUM_CLASSES, H2), jnp.float32, -xavier, xavier),
    }

    loss = arcface_loss_with_mlp(x, y, params, m=0.5, s=64.0)
    loss = jax.block_until_ready(loss)

    ref = reference_loss(x, y, params, m=0.5, s=64.0)
    # rsqrt/exp run on the EUP approximate-transcendental path; allow a slightly
    # looser tolerance than pure-XLA f32.
    assert jnp.allclose(loss, ref, rtol=2e-3, atol=2e-3), (loss, ref)

    print("KERNEL_OK")
</pallas_src>

<mosaic_0001>
module attributes {stable_mosaic.version = 11 : i64} {
  func.func @normalize_cols_kernel(%arg0: i32, %arg1: memref<16x128xf32, #tpu.memory_space<vmem>>, %arg2: memref<16x128xf32, #tpu.memory_space<vmem>>) attributes {dimension_semantics = [#tpu.dimension_semantics<parallel>], iteration_bounds = array<i64: 1>, scalar_prefetch = 0 : i64, scratch_operands = 0 : i64, tpu.core_type = #tpu.core_type<tc>, window_params = [{transform_indices = @transform_0, window_bounds = array<i64: 16, 128>}, {transform_indices = @transform_1, window_bounds = array<i64: 16, 128>}]} {
    %c0 = arith.constant 0 : index
    %c0_0 = arith.constant 0 : index
    %0 = vector.load %arg1[%c0, %c0_0] : memref<16x128xf32, #tpu.memory_space<vmem>>, vector<16x128xf32>
    %1 = arith.mulf %0, %0 : vector<16x128xf32>
    %cst = arith.constant dense<0.000000e+00> : vector<128xf32>
    %2 = vector.multi_reduction <add>, %1, %cst [0] : vector<16x128xf32> to vector<128xf32>
    %3 = vector.shape_cast %2 : vector<128xf32> to vector<1x128xf32>
    %cst_1 = arith.constant 1.000000e-24 : f32
    %4 = vector.broadcast %cst_1 : f32 to vector<1x128xf32>
    %5 = arith.maximumf %3, %4 : vector<1x128xf32>
    %6 = math.rsqrt %5 : vector<1x128xf32>
    %7 = vector.broadcast %6 : vector<1x128xf32> to vector<16x128xf32>
    %8 = arith.mulf %0, %7 : vector<16x128xf32>
    %c0_2 = arith.constant 0 : index
    %c0_3 = arith.constant 0 : index
    %9 = vector.load %arg2[%c0_2, %c0_3] : memref<16x128xf32, #tpu.memory_space<vmem>>, vector<16x128xf32>
    tpu.vector_store %arg2[%c0_2, %c0_3], %8 {strides = array<i32>} : memref<16x128xf32, #tpu.memory_space<vmem>>, vector<16x128xf32>,
    return
  }
  func.func @transform_0(%arg0: i32) -> (i32, i32) {
    %c0_i32 = arith.constant 0 : i32
    %c0_i32_0 = arith.constant 0 : i32
    return %c0_i32, %arg0 : i32, i32
  }
  func.func @transform_1(%arg0: i32) -> (i32, i32) {
    %c0_i32 = arith.constant 0 : i32
    %c0_i32_0 = arith.constant 0 : i32
    return %c0_i32, %arg0 : i32, i32
  }
}

</mosaic_0001>

<bundles_post_ra>
// kernel: tpu_custom_call.1
= control target key start
LH: loop header
LB: loop body
LE: loop exit
PB: predicated region body
PF: predicated region fallthrough
CT: control target
= control target key end

     0   :  { %6 = vsyncpa [#allocation3], 0  ;;  %s155_s0 = inlined_call_operand.hbm [shape: f32[16,128], index: 0, kind: input, shape index: {}]   ;;  %s156_s1 = inlined_call_operand.hbm [shape: f32[16,128], index: 1, kind: output, shape index: {}]  }
   0x1   :  { %7 = vsyncpa [#allocation4], 0  ;;  %s111_s6 = smov [#allocation2]   ;;  %s63_s10 = scalar_lea.hbm %s155_s0, 256 }
   0x2   :  { %s13_s7 = sshll.u32 %s111_s6, 4  ;;  %p64_p0 = scmp.ne.s32.totalorder %s155_s0, %s63_s10  ;;  %s14_s7 = int_to_ptr.vmem [resolvable:$true] %s13_s7 }
   0x3   :  { %p67_p1 = scmp.lt.u32.totalorder %s63_s10, %s155_s0 }
   0x5   :  { %p69_p2 = pnand %p67_p1, %p64_p0 }
   0x7   :  { %72 = shalt.err (!%p69_p2)
}
   0x8   :  { %s73_s15 = scalar_lea.vmem %s14_s7, 256  ;;  %p78_p4 = scmp.lt.s32.totalorder %s14_s7, %s14_s7 }
   0x9   :  { %p74_p3 = scmp.ne.s32.totalorder %s14_s7, %s73_s15  ;;  %p79_p5 = scmp.lt.s32.totalorder %s73_s15, %s73_s15 }
   0xb   :  { %p80_p6 = por %p79_p5, %p78_p4 }
   0xd   :  { %p81_p7 = pnand %p80_p6, %p74_p3 }
   0xf   :  { %84 = shalt.err (!%p81_p7)
}
  0x10   :  { %s112_s16 = smov 128   ;;  %s113_s17 = smov 8  }
  0x11   :  { %19 = dma.hbm_to_vmem [thread:$0]  %s155_s0, 256, %s14_s7, [#allocation3], %s112_s16, %s112_s16, %s113_s17  }
  0x12   :  { %107 = dma.done.wait [#allocation3], 256  }
  0x13   :  { %108 = vsyncadd [#allocation3], 4294967040  ;;  %v23_v0 = vld [vmem:[#allocation2] sm:$0xff]  ;;  %v24_v1 = vld [vmem:[#allocation2 + $0x8] sm:$0xff]  ;;  %s114_s20 = smov [#allocation5]  }
  0x14   :  { %v25_v2 = vmul.f32 %v23_v0, %v23_v0  ;;  %v26_v3 = vmul.f32 %v24_v1, %v24_v1  ;;  %s45_s21 = sshll.u32 %s114_s20, 4  ;;  %s46_s21 = int_to_ptr.vmem [resolvable:$true] %s45_s21 }
  0x15   :  { %s85_s0 = scalar_lea.vmem %s46_s21, 256  ;;  %p90_p9 = scmp.lt.s32.totalorder %s46_s21, %s46_s21 }
  0x16   :  { %v27_v4 = vadd.f32 %v26_v3, %v25_v2  ;;  %p86_p8 = scmp.ne.s32.totalorder %s46_s21, %s85_s0  ;;  %p91_p10 = scmp.lt.s32.totalorder %s85_s0, %s85_s0 }
  0x18   :  { %v28_v5 = vrot.slane %v27_v4, 4  ;;  %p92_p11 = por %p91_p10, %p90_p9 }
  0x1a   :  { %v29_v6 = vadd.f32 %v28_v5, %v27_v4  ;;  %p93_p12 = pnand %p92_p11, %p86_p8 }
  0x1c   :  { %v30_v7 = vrot.slane %v29_v6, 2 }
  0x1e   :  { %v31_v8 = vadd.f32 %v30_v7, %v29_v6 }
  0x20   :  { %v32_v9 = vrot.slane %v31_v8, 1 }
  0x22   :  { %v33_v10 = vadd.f32 %v32_v9, %v31_v8 }
  0x24   :  { %v34_v11 = vmax.f32 %v33_v10, 1e-24 }
  0x26   :  { %61 = vrsqrt.f32 %v34_v11 }
  0x30   :  { %v62_v12 = vpop.eup %61 }
  0x31   :  { %v36_v13 = vmul.f32 %v62_v12, %v23_v0  ;;  %v37_v14 = vmul.f32 %v62_v12, %v24_v1 }
  0x33   :  { %38 = vst [vmem:[#allocation5] sm:$0xff] %v36_v13  ;;  %39 = vst [vmem:[#allocation5 + $0x8] sm:$0xff] %v37_v14 }
  0x34   :  { %96 = shalt.err (!%p93_p12)
}
  0x35   :  { %s97_s24 = scalar_lea.hbm %s156_s1, 256 }
  0x36   :  { %p98_p13 = scmp.ne.s32.totalorder %s156_s1, %s97_s24  ;;  %p101_p0 = scmp.lt.u32.totalorder %s97_s24, %s156_s1 }
  0x38   :  { %p103_p1 = pnand %p101_p0, %p98_p13 }
  0x3a   :  { %106 = shalt.err (!%p103_p1)
}
  0x3b   :  { %51 = dma.vmem_to_hbm [thread:$0]  %s46_s21, 256, %s156_s1, [#allocation4], %s112_s16, %s112_s16, %s113_s17  }
  0x3c   :  { %109 = dma.done.wait [#allocation4], 256  }
  0x3d   :  { %110 = vsyncadd [#allocation4], 4294967040 }
  0x3e   :  { %55 = vsyncpa [#allocation3], 1 }
  0x3f   :  { %56 = vsyncpa [#allocation4], 1 }

</bundles_post_ra>
